<compile_context>
chip_gen: v7x
topology: tpu7x:2x2x1
jax: 0.10.0
libtpu: 0.0.40
codegen_flags: <defaults>
</compile_context>

<pallas_src>
import functools

import jax
import jax.numpy as jnp
from jax.experimental import pallas as pl
from jax.experimental.pallas import tpu as pltpu


def _mha_kernel(q_ref, k_ref, wq_ref, wk_ref, wv_ref, o_ref, *,
                num_heads, key_dim, num_units, batch_block):
    # q_ref: (G*T_q, Dq)   k_ref: (G*T_k, Dk)
    # wq_ref: (Dq, U)      wk_ref/wv_ref: (Dk, U)      o_ref: (G*T_q, U)
    G = batch_block
    H = num_heads
    d = num_units // H
    t_q = q_ref.shape[0] // G
    t_k = k_ref.shape[0] // G

    q = q_ref[...]
    k = k_ref[...]

    # PyTorch scales by key_dim**0.5 (input key feature dim, NOT the head dim).
    scale = 1.0 / (float(key_dim) ** 0.5)

    # Wide projections: contraction over the full input feature dim with
    # M = G*T rows (MXU-friendly after batch blocking).  Scale folded into Q.
    Q = jnp.dot(q, wq_ref[...], preferred_element_type=jnp.float32) * scale  # (G*T_q, U)
    K = jnp.dot(k, wk_ref[...], preferred_element_type=jnp.float32)          # (G*T_k, U)
    V = jnp.dot(k, wv_ref[...], preferred_element_type=jnp.float32)          # (G*T_k, U)

    # MXU operand dtype follows the input dtype (bf16 inputs => bf16 matmuls
    # with fp32 accumulation).  Softmax math stays fp32 on all generations.
    op_dtype = q_ref.dtype
    low_precision = jnp.dtype(op_dtype).itemsize < 4
    Qc = Q.astype(op_dtype)
    Kc = K.astype(op_dtype)
    Vc = V.astype(op_dtype)

    def split_heads(x, t):
        # (G*t, H*d) -> (H*G, t, d), batch index = h*G + g.  Static head
        # slices + ONE major-axis concat; the slices are free (tile-aligned)
        # views whenever d % 128 == 0.
        parts = [x[:, h * d:(h + 1) * d] for h in range(H)]     # each (G*t, d)
        return jnp.concatenate(parts, axis=0).reshape(H * G, t, d)

    Qh = split_heads(Qc, t_q)     # (H*G, T_q, d)
    Kh = split_heads(Kc, t_k)     # (H*G, T_k, d)
    Vh = split_heads(Vc, t_k)     # (H*G, T_k, d)

    # ONE batched score matmul for all (head, batch) pairs — contract the last
    # dims of Q and K (no explicit transpose), fp32 accumulation.
    s = jnp.einsum("bqd,bkd->bqk", Qh, Kh,
                   preferred_element_type=jnp.float32)           # (H*G, T_q, T_k)

    # ONE fp32 softmax pass over the key axis for every (head, batch) tile.
    m = jnp.max(s, axis=-1, keepdims=True)
    p = jnp.exp(s - m)
    l = jnp.sum(p, axis=-1, keepdims=True)
    # Fold 1/l into the small (T_q, d) outputs instead of dividing the
    # (T_q, T_k) probability tile; approx reciprocal (EUP) on the bf16 path.
    inv_l = pl.reciprocal(l, approx=low_precision)

    o = jnp.einsum("bqk,bkd->bqd", p.astype(op_dtype), Vh,
                   preferred_element_type=jnp.float32) * inv_l   # (H*G, T_q, d) fp32

    # (H*G, T_q, d) -> (G*T_q, H*d): one lane concat, then a single full-tile
    # store (lane-dense whenever num_units % 128 == 0).
    o = o.reshape(H, G * t_q, d)
    o_ref[...] = jnp.concatenate([o[h] for h in range(H)],
                                 axis=-1).astype(o_ref.dtype)


def prepare_mha_weights(w_query, w_key, w_value):
    """One-time weight preprocessing (hoisted out of the per-call path).

    Takes PyTorch nn.Linear weights, layout [out_features, in_features], and
    returns the [in_features, out_features] layouts the kernel consumes.
    """
    return (jnp.asarray(w_query).T, jnp.asarray(w_key).T, jnp.asarray(w_value).T)


def _choose_batch_block(n, t_q, target_rows=256, min_grid_steps=2):
    """Largest divisor G of n with G*T_q <= ~256 MXU rows, keeping >= 2 grid
    steps when n allows it (so both v7x TensorCores stay busy)."""
    best = 1
    for g in range(1, n + 1):
        if n % g:
            continue
        steps = n // g
        if g * t_q <= max(target_rows, t_q) and (steps >= min_grid_steps or n < min_grid_steps):
            best = g
    return best


def multi_head_attention(query, key, wq_t, wk_t, wv_t, *, num_heads, key_dim,
                         batch_block=None):
    """query: [N, T_q, Dq], key: [N, T_k, Dk].
    wq_t: [Dq, U], wk_t/wv_t: [Dk, U] (pre-transposed via prepare_mha_weights).
    returns: [N, T_q, U]"""
    N, T_q, Dq = query.shape
    Nk, T_k, Dk = key.shape
    assert Nk == N
    U = wq_t.shape[1]
    assert U % num_heads == 0

    G = batch_block if batch_block is not None else _choose_batch_block(N, T_q)
    assert N % G == 0

    # Leading-dim merges only: metadata-only reshapes, no extra HBM traffic.
    q2 = query.reshape(N * T_q, Dq)
    k2 = key.reshape(N * T_k, Dk)

    kernel = functools.partial(_mha_kernel, num_heads=num_heads, key_dim=key_dim,
                               num_units=U, batch_block=G)

    out2 = pl.pallas_call(
        kernel,
        out_shape=jax.ShapeDtypeStruct((N * T_q, U), query.dtype),
        grid_spec=pltpu.PrefetchScalarGridSpec(
            num_scalar_prefetch=0,
            grid=(N // G,),
            in_specs=[
                # Streamed per-step blocks of G batch elements.  If DMA were
                # still exposed here, pipeline_mode=pl.Buffered(3) is the knob.
                pl.BlockSpec((G * T_q, Dq), lambda i: (i, 0)),
                pl.BlockSpec((G * T_k, Dk), lambda i: (i, 0)),
                # Weights: constant block index across the grid -> fetched once.
                pl.BlockSpec((Dq, U), lambda i: (0, 0)),
                pl.BlockSpec((Dk, U), lambda i: (0, 0)),
                pl.BlockSpec((Dk, U), lambda i: (0, 0)),
            ],
            out_specs=pl.BlockSpec((G * T_q, U), lambda i: (i, 0)),
        ),
        compiler_params=pltpu.CompilerParams(
            dimension_semantics=("parallel",),   # batch groups shard across TCs
        ),
    )(q2, k2, wq_t, wk_t, wv_t)

    return out2.reshape(N, T_q, U)


def _reference(query, key, wq, wk, wv, *, num_heads, key_dim):
    # Pure-JAX reference mirroring the PyTorch forward exactly.
    Q = jnp.einsum("ntd,ud->ntu", query, wq)
    K = jnp.einsum("ntd,ud->ntu", key, wk)
    V = jnp.einsum("ntd,ud->ntu", key, wv)
    Qh = jnp.stack(jnp.split(Q, num_heads, axis=2), axis=0)  # (h, N, T_q, d)
    Kh = jnp.stack(jnp.split(K, num_heads, axis=2), axis=0)
    Vh = jnp.stack(jnp.split(V, num_heads, axis=2), axis=0)
    s = jnp.einsum("hnqd,hnkd->hnqk", Qh, Kh) / (float(key_dim) ** 0.5)
    p = jax.nn.softmax(s, axis=3)
    o = jnp.einsum("hnqk,hnkd->hnqd", p, Vh)
    return jnp.concatenate(jnp.split(o, num_heads, axis=0), axis=3)[0]  # (N, T_q, U)


if __name__ == "__main__":
    N, T_q, T_k = 4, 8, 16          # N=4 -> batch block G=2, grid of 2 steps
    query_dim, key_dim = 16, 12
    num_units, num_heads = 32, 4

    root = jax.random.PRNGKey(0)
    k1, k2, k3, k4, k5 = jax.random.split(root, 5)

    query = jax.random.normal(k1, (N, T_q, query_dim), dtype=jnp.float32)
    key = jax.random.normal(k2, (N, T_k, key_dim), dtype=jnp.float32)

    # nn.Linear(bias=False) weights, layout [out_features, in_features].
    wq = jax.random.normal(k3, (num_units, query_dim), dtype=jnp.float32) * 0.1
    wk = jax.random.normal(k4, (num_units, key_dim), dtype=jnp.float32) * 0.1
    wv = jax.random.normal(k5, (num_units, key_dim), dtype=jnp.float32) * 0.1

    # One-time weight preparation (hoisted out of the per-call path).
    wq_t, wk_t, wv_t = prepare_mha_weights(wq, wk, wv)

    # ---- fp32 path: exact match vs reference ----
    out = multi_head_attention(query, key, wq_t, wk_t, wv_t,
                               num_heads=num_heads, key_dim=key_dim)
    out = jax.block_until_ready(out)
    ref = _reference(query, key, wq, wk, wv, num_heads=num_heads, key_dim=key_dim)
    assert out.shape == (N, T_q, num_units)
    assert jnp.allclose(out, ref, atol=1e-5, rtol=1e-5), "fp32 mismatch vs reference"

    # ---- bf16 operand path (MXU-friendly); softmax stats stay fp32 in-kernel ----
    q_bf, k_bf = query.astype(jnp.bfloat16), key.astype(jnp.bfloat16)
    wq_bt, wk_bt, wv_bt = prepare_mha_weights(wq.astype(jnp.bfloat16),
                                              wk.astype(jnp.bfloat16),
                                              wv.astype(jnp.bfloat16))
    out_bf = multi_head_attention(q_bf, k_bf, wq_bt, wk_bt, wv_bt,
                                  num_heads=num_heads, key_dim=key_dim)
    out_bf = jax.block_until_ready(out_bf)
    ref_bf = _reference(q_bf.astype(jnp.float32), k_bf.astype(jnp.float32),
                        wq.astype(jnp.bfloat16).astype(jnp.float32),
                        wk.astype(jnp.bfloat16).astype(jnp.float32),
                        wv.astype(jnp.bfloat16).astype(jnp.float32),
                        num_heads=num_heads, key_dim=key_dim)
    assert jnp.allclose(out_bf.astype(jnp.float32), ref_bf,
                        atol=5e-2, rtol=5e-2), "bf16 mismatch vs reference"

    print("KERNEL_OK")
</pallas_src>

<mosaic_0001>
module attributes {stable_mosaic.version = 11 : i64} {
  func.func @_mha_kernel(%arg0: i32, %arg1: memref<16x16xf32, #tpu.memory_space<vmem>>, %arg2: memref<32x12xf32, #tpu.memory_space<vmem>>, %arg3: memref<16x32xf32, #tpu.memory_space<vmem>>, %arg4: memref<12x32xf32, #tpu.memory_space<vmem>>, %arg5: memref<12x32xf32, #tpu.memory_space<vmem>>, %arg6: memref<16x32xf32, #tpu.memory_space<vmem>>) attributes {dimension_semantics = [#tpu.dimension_semantics<parallel>], iteration_bounds = array<i64: 2>, scalar_prefetch = 0 : i64, scratch_operands = 0 : i64, tpu.core_type = #tpu.core_type<tc>, window_params = [{transform_indices = @transform_0, window_bounds = array<i64: 16, 16>}, {transform_indices = @transform_1, window_bounds = array<i64: 32, 12>}, {pipeline_mode = #tpu.pipeline_mode<synchronous>, transform_indices = @transform_2, window_bounds = array<i64: 16, 32>}, {pipeline_mode = #tpu.pipeline_mode<synchronous>, transform_indices = @transform_3, window_bounds = array<i64: 12, 32>}, {pipeline_mode = #tpu.pipeline_mode<synchronous>, transform_indices = @transform_4, window_bounds = array<i64: 12, 32>}, {transform_indices = @transform_5, window_bounds = array<i64: 16, 32>}]} {
    %c0 = arith.constant 0 : index
    %c0_0 = arith.constant 0 : index
    %0 = vector.load %arg1[%c0, %c0_0] : memref<16x16xf32, #tpu.memory_space<vmem>>, vector<16x16xf32>
    %c0_1 = arith.constant 0 : index
    %c0_2 = arith.constant 0 : index
    %1 = vector.load %arg2[%c0_1, %c0_2] : memref<32x12xf32, #tpu.memory_space<vmem>>, vector<32x12xf32>
    %c0_3 = arith.constant 0 : index
    %c0_4 = arith.constant 0 : index
    %2 = vector.load %arg3[%c0_3, %c0_4] : memref<16x32xf32, #tpu.memory_space<vmem>>, vector<16x32xf32>
    %cst = arith.constant dense<0.000000e+00> : vector<16x32xf32>
    %3 = tpu.matmul %0, %2, %cst {dimension_numbers = #tpu.dot_dimension_numbers<[1], [0], [0], [1], [0, 0, 1, 1], [], []>} : vector<16x16xf32>, vector<16x32xf32>, vector<16x32xf32> -> vector<16x32xf32>
    %cst_5 = arith.constant 0.288675129 : f32
    %4 = vector.broadcast %cst_5 : f32 to vector<16x32xf32>
    %5 = arith.mulf %3, %4 : vector<16x32xf32>
    %c0_6 = arith.constant 0 : index
    %c0_7 = arith.constant 0 : index
    %6 = vector.load %arg4[%c0_6, %c0_7] : memref<12x32xf32, #tpu.memory_space<vmem>>, vector<12x32xf32>
    %cst_8 = arith.constant dense<0.000000e+00> : vector<32x32xf32>
    %7 = tpu.matmul %1, %6, %cst_8 {dimension_numbers = #tpu.dot_dimension_numbers<[1], [0], [0], [1], [0, 0, 1, 1], [], []>} : vector<32x12xf32>, vector<12x32xf32>, vector<32x32xf32> -> vector<32x32xf32>
    %c0_9 = arith.constant 0 : index
    %c0_10 = arith.constant 0 : index
    %8 = vector.load %arg5[%c0_9, %c0_10] : memref<12x32xf32, #tpu.memory_space<vmem>>, vector<12x32xf32>
    %cst_11 = arith.constant dense<0.000000e+00> : vector<32x32xf32>
    %9 = tpu.matmul %1, %8, %cst_11 {dimension_numbers = #tpu.dot_dimension_numbers<[1], [0], [0], [1], [0, 0, 1, 1], [], []>} : vector<32x12xf32>, vector<12x32xf32>, vector<32x32xf32> -> vector<32x32xf32>
    %10 = vector.extract_strided_slice %5 {offsets = [0, 0], sizes = [16, 8], strides = [1, 1]} : vector<16x32xf32> to vector<16x8xf32>
    %11 = vector.extract_strided_slice %5 {offsets = [0, 8], sizes = [16, 8], strides = [1, 1]} : vector<16x32xf32> to vector<16x8xf32>
    %12 = vector.extract_strided_slice %5 {offsets = [0, 16], sizes = [16, 8], strides = [1, 1]} : vector<16x32xf32> to vector<16x8xf32>
    %13 = vector.extract_strided_slice %5 {offsets = [0, 24], sizes = [16, 8], strides = [1, 1]} : vector<16x32xf32> to vector<16x8xf32>
    %14 = tpu.concatenate %10, %11, %12, %13 in 0 : vector<16x8xf32>, vector<16x8xf32>, vector<16x8xf32>, vector<16x8xf32> -> vector<64x8xf32>
    %15 = vector.shape_cast %14 : vector<64x8xf32> to vector<8x8x8xf32>
    %16 = vector.extract_strided_slice %7 {offsets = [0, 0], sizes = [32, 8], strides = [1, 1]} : vector<32x32xf32> to vector<32x8xf32>
    %17 = vector.extract_strided_slice %7 {offsets = [0, 8], sizes = [32, 8], strides = [1, 1]} : vector<32x32xf32> to vector<32x8xf32>
    %18 = vector.extract_strided_slice %7 {offsets = [0, 16], sizes = [32, 8], strides = [1, 1]} : vector<32x32xf32> to vector<32x8xf32>
    %19 = vector.extract_strided_slice %7 {offsets = [0, 24], sizes = [32, 8], strides = [1, 1]} : vector<32x32xf32> to vector<32x8xf32>
    %20 = tpu.concatenate %16, %17, %18, %19 in 0 : vector<32x8xf32>, vector<32x8xf32>, vector<32x8xf32>, vector<32x8xf32> -> vector<128x8xf32>
    %21 = vector.shape_cast %20 : vector<128x8xf32> to vector<8x16x8xf32>
    %22 = vector.extract_strided_slice %9 {offsets = [0, 0], sizes = [32, 8], strides = [1, 1]} : vector<32x32xf32> to vector<32x8xf32>
    %23 = vector.extract_strided_slice %9 {offsets = [0, 8], sizes = [32, 8], strides = [1, 1]} : vector<32x32xf32> to vector<32x8xf32>
    %24 = vector.extract_strided_slice %9 {offsets = [0, 16], sizes = [32, 8], strides = [1, 1]} : vector<32x32xf32> to vector<32x8xf32>
    %25 = vector.extract_strided_slice %9 {offsets = [0, 24], sizes = [32, 8], strides = [1, 1]} : vector<32x32xf32> to vector<32x8xf32>
    %26 = tpu.concatenate %22, %23, %24, %25 in 0 : vector<32x8xf32>, vector<32x8xf32>, vector<32x8xf32>, vector<32x8xf32> -> vector<128x8xf32>
    %27 = vector.shape_cast %26 : vector<128x8xf32> to vector<8x16x8xf32>
    "tpu.trace_start"() <{level = 10 : i32, message = "bqd,bkd->bqk"}> : () -> ()
    %cst_12 = arith.constant dense<0.000000e+00> : vector<8x8x16xf32>
    %28 = tpu.matmul %15, %21, %cst_12 {dimension_numbers = #tpu.dot_dimension_numbers<[2], [2], [1], [1], [0, 0, 0, 1, 1, 1], [0], [0]>} : vector<8x8x8xf32>, vector<8x16x8xf32>, vector<8x8x16xf32> -> vector<8x8x16xf32>
    "tpu.trace_stop"() : () -> ()
    %cst_13 = arith.constant dense<0xFF800000> : vector<8x8xf32>
    %29 = vector.multi_reduction <maximumf>, %28, %cst_13 [2] : vector<8x8x16xf32> to vector<8x8xf32>
    %30 = vector.shape_cast %29 : vector<8x8xf32> to vector<8x8x1xf32>
    %31 = vector.broadcast %30 : vector<8x8x1xf32> to vector<8x8x16xf32>
    %32 = arith.subf %28, %31 : vector<8x8x16xf32>
    %33 = math.exp %32 : vector<8x8x16xf32>
    %cst_14 = arith.constant dense<0.000000e+00> : vector<8x8xf32>
    %34 = vector.multi_reduction <add>, %33, %cst_14 [2] : vector<8x8x16xf32> to vector<8x8xf32>
    %35 = vector.shape_cast %34 : vector<8x8xf32> to vector<8x8x1xf32>
    %36 = tpu.reciprocal %35 : vector<8x8x1xf32> -> vector<8x8x1xf32>
    "tpu.trace_start"() <{level = 10 : i32, message = "bqk,bkd->bqd"}> : () -> ()
    %cst_15 = arith.constant dense<0.000000e+00> : vector<8x8x8xf32>
    %37 = tpu.matmul %33, %27, %cst_15 {dimension_numbers = #tpu.dot_dimension_numbers<[2], [1], [1], [2], [0, 0, 0, 1, 1, 2], [0], [0]>} : vector<8x8x16xf32>, vector<8x16x8xf32>, vector<8x8x8xf32> -> vector<8x8x8xf32>
    "tpu.trace_stop"() : () -> ()
    %38 = vector.broadcast %36 : vector<8x8x1xf32> to vector<8x8x8xf32>
    %39 = arith.mulf %37, %38 : vector<8x8x8xf32>
    %40 = vector.shape_cast %39 : vector<8x8x8xf32> to vector<4x16x8xf32>
    %41 = vector.extract_strided_slice %40 {offsets = [0, 0, 0], sizes = [1, 16, 8], strides = [1, 1, 1]} : vector<4x16x8xf32> to vector<1x16x8xf32>
    %42 = vector.shape_cast %41 : vector<1x16x8xf32> to vector<16x8xf32>
    %43 = vector.extract_strided_slice %40 {offsets = [1, 0, 0], sizes = [1, 16, 8], strides = [1, 1, 1]} : vector<4x16x8xf32> to vector<1x16x8xf32>
    %44 = vector.shape_cast %43 : vector<1x16x8xf32> to vector<16x8xf32>
    %45 = vector.extract_strided_slice %40 {offsets = [2, 0, 0], sizes = [1, 16, 8], strides = [1, 1, 1]} : vector<4x16x8xf32> to vector<1x16x8xf32>
    %46 = vector.shape_cast %45 : vector<1x16x8xf32> to vector<16x8xf32>
    %47 = vector.extract_strided_slice %40 {offsets = [3, 0, 0], sizes = [1, 16, 8], strides = [1, 1, 1]} : vector<4x16x8xf32> to vector<1x16x8xf32>
    %48 = vector.shape_cast %47 : vector<1x16x8xf32> to vector<16x8xf32>
    %49 = tpu.concatenate %42, %44, %46, %48 in 1 : vector<16x8xf32>, vector<16x8xf32>, vector<16x8xf32>, vector<16x8xf32> -> vector<16x32xf32>
    %c0_16 = arith.constant 0 : index
    %c0_17 = arith.constant 0 : index
    %50 = vector.load %arg6[%c0_16, %c0_17] : memref<16x32xf32, #tpu.memory_space<vmem>>, vector<16x32xf32>
    tpu.vector_store %arg6[%c0_16, %c0_17], %49 {strides = array<i32>} : memref<16x32xf32, #tpu.memory_space<vmem>>, vector<16x32xf32>,
    return
  }
  func.func @transform_0(%arg0: i32) -> (i32, i32) {
    %c0_i32 = arith.constant 0 : i32
    %c0_i32_0 = arith.constant 0 : i32
    return %arg0, %c0_i32 : i32, i32
  }
  func.func @transform_1(%arg0: i32) -> (i32, i32) {
    %c0_i32 = arith.constant 0 : i32
    %c0_i32_0 = arith.constant 0 : i32
    return %arg0, %c0_i32 : i32, i32
  }
  func.func @transform_2(%arg0: i32) -> (i32, i32) {
    %c0_i32 = arith.constant 0 : i32
    %c0_i32_0 = arith.constant 0 : i32
    %c0_i32_1 = arith.constant 0 : i32
    return %c0_i32, %c0_i32_0 : i32, i32
  }
  func.func @transform_3(%arg0: i32) -> (i32, i32) {
    %c0_i32 = arith.constant 0 : i32
    %c0_i32_0 = arith.constant 0 : i32
    %c0_i32_1 = arith.constant 0 : i32
    return %c0_i32, %c0_i32_0 : i32, i32
  }
  func.func @transform_4(%arg0: i32) -> (i32, i32) {
    %c0_i32 = arith.constant 0 : i32
    %c0_i32_0 = arith.constant 0 : i32
    %c0_i32_1 = arith.constant 0 : i32
    return %c0_i32, %c0_i32_0 : i32, i32
  }
  func.func @transform_5(%arg0: i32) -> (i32, i32) {
    %c0_i32 = arith.constant 0 : i32
    %c0_i32_0 = arith.constant 0 : i32
    return %arg0, %c0_i32 : i32, i32
  }
}

</mosaic_0001>

<bundles_post_ra>
// kernel: tpu_custom_call.1
= control target key start
LH: loop header
LB: loop body
LE: loop exit
PB: predicated region body
PF: predicated region fallthrough
CT: control target
= control target key end

     0   :  { %10 = vsyncpa [#allocation3], 0  ;;  %s2919_s0 = inlined_call_operand.vmem [shape: f32[32,16], index: 0, kind: input, shape index: {}]   ;;  %s2920_s1 = inlined_call_operand.vmem [shape: f32[64,12], index: 1, kind: input, shape index: {}]   ;;  %s2921_s2 = inlined_call_operand.vmem [shape: f32[16,32], index: 2, kind: input, shape index: {}]   ;;  %s2922_s3 = inlined_call_operand.vmem [shape: f32[12,32], index: 3, kind: input, shape index: {}]   ;;  %s2923_s4 = inlined_call_operand.vmem [shape: f32[12,32], index: 4, kind: input, shape index: {}]   ;;  %s2924_s5 = inlined_call_operand.hbm [shape: f32[32,32], index: 5, kind: output, shape index: {}]  }
   0x1   :  { %12 = vsyncpa [#allocation3 + $0x1], 0  ;;  %s2601_s18 = smov 0   ;;  %s2603_s19 = smov 0  }
   0x2   :  { %s2605_s20 = smov 0   ;;  %s2607_s21 = smov 0  }
   0x3 LB: > { %s2622_s22 = sadd.s32 4294967295, %s2557_s21   ;;  %s2019_s23 = sadd.s32 4294967294, %s2557_s21   ;;  %s2557_s21 = sphi %s2607_s21, %s2934_s21   ;;  %s2553_s20 = sphi %s2605_s20, %s2933_s20   ;;  %s2549_s19 = sphi %s2603_s19, %s2932_s19   ;;  %s2545_s18 = sphi %s2601_s18, %s2931_s18  }
   0x4   : > { %s2626_s24 = sadd.s32 1, %s2557_s21   ;;  %s140_s25 = sadd.s32 1, %s2553_s20 }
   0x5   : > { %s137_s26 = ssub.s32 %s2557_s21, %s2626_s24  ;;  %p150_p0 = scmp.ne.s32.totalorder %s2553_s20, %s2549_s19 }
   0x6   : > { %p138_p1 = scmp.eq.s32.totalorder %s137_s26, 0  ;;  %p151_p2 = scmp.eq.s32.totalorder %s2622_s22, 1 }
   0x7   : > { %p156_p3 = scmp.ne.s32.totalorder %s2549_s19, %s2545_s18  ;;  %p157_p4 = scmp.eq.s32.totalorder %s2019_s23, 1 }
   0x8   : > { %s2637_s27 = scalar_select %p138_p1, %s2553_s20, %s140_s25  }
   0x9   : > { %p2639_p5 = por %p151_p2, %p150_p0  ;;  %p2643_p6 = por %p157_p4, %p156_p3 }
   0xa   : > { %p2022_p7 = scmp.ge.s32.totalorder %s2557_s21, 1  ;;  %p202_p8 = scmp.lt.s32.totalorder %s2557_s21, 3 }
   0xc   : > { %p203_p9 = pnand %p2022_p7, %p202_p8 }
   0xd   : > { %v340_v0 = vld [vmem:[%s2922_s3] sm:$0xff] (!%p203_p9)  ;;  %v341_v1 = vld [vmem:[%s2922_s3 + $0x8] sm:$0xf] (!%p203_p9)  ;;  %vm355_vm0 = vcmask (!%p203_p9), 1043456   ;;  %s2026_s9 = sshll.u32 (!%p203_p9), %s2622_s22, 2  ;;  %vm2559_vm1 = vmmov (!%p203_p9), 1  }
   0xe   : > { %206 = sbr.rel (%p203_p9) target bundleno = 1102 (0x44e), region = 40  ;;  %v2285_v2 = vpack.c.bf16 (!%p203_p9), %v341_v1, %v340_v0  ;;  %vm2656_vm2 = vmpackc.low (!%p203_p9), %vm355_vm0, %vm2559_vm1  ;;  %p242_p10 = scmp.lt.s32.totalorder (!%p203_p9), %s2026_s9, 7  ;;  %v254_v4 = vld [vmem:[%s2921_s2] sm:$0xff] (!%p203_p9)  ;;  %v255_v5 = vld [vmem:[%s2921_s2 + $0x8] sm:$0xff] (!%p203_p9)  ;;  %vm342_vm3 = vcmask (!%p203_p9), 97280   ;;  %vm256_vm4 = vcmask (!%p203_p9), 130048  }
   0xf   : > { %s2024_s14 = sshll.u32 (!%p203_p9), %s2622_s22, 1  ;;  %v2281_v6 = vpack.c.bf16 (!%p203_p9), %v255_v5, %v254_v4  ;;  %v444_v7 = vld [vmem:[%s2923_s4] sm:$0xff] (!%p203_p9)  ;;  %v445_v8 = vld [vmem:[%s2923_s4 + $0x8] sm:$0xf] (!%p203_p9)  ;;  %v2560_v16 = vmov (!%p203_p9), 0.0|0.0   ;;  %vm2561_vm5 = vmmov (!%p203_p9), 0  }
  0x10   : > { %p236_p11 = scmp.lt.s32.totalorder (!%p203_p9), %s2024_s14, 3  ;;  %2287 = vmatprep.subr.msk.bf16.mxu1 (!%p203_p9), %vm2656_vm2, %v2285_v2  ;;  %v2291_v9 = vpack.c.bf16 (!%p203_p9), %v445_v8, %v444_v7  ;;  %v2562_v17 = vmov (!%p203_p9), 0.0   ;;  %vm616_vm6 = vcmask (!%p203_p9), 64512   ;;  %s2564_s12 = smov (!%p203_p9), 120   ;;  %vm1925_vm8 = vcmask (!%p203_p9), 195584  }
  0x11   : > { %2290 = vmatpush3.bf16.msk.msra.mxu1 (!%p203_p9), %vm2656_vm2, %v2285_v2  ;;  %2282 = vmatprep.subr.bf16.mxu0 (!%p203_p9), %v2281_v6  ;;  %vm2705_vm7 = vmpackc.low (!%p203_p9), %vm616_vm6, %vm616_vm6  ;;  %s2565_s13 = smov (!%p203_p9), 104   ;;  %s2567_s15 = smov (!%p203_p9), 16   ;;  %vm1928_vm9 = vcmask (!%p203_p9), 261120  }
  0x12   : > { %2284 = vmatpush3.bf16.msra.mxu0 (!%p203_p9), %v2281_v6  ;;  %2297 = vmatprep.subr.bf16.mxu1 (!%p203_p9), %v2560_v16  ;;  %s2568_s16 = smov (!%p203_p9), 24   ;;  %s232_s17 = sand.u32 (!%p203_p9), 1, %s2549_s19  }
  0x13   : > { %2293 = vmatprep.subr.msk.bf16.mxu0 (!%p203_p9), %vm2656_vm2, %v2291_v9  ;;  %s2023_s23 = sshll.u32 (!%p203_p9), %s232_s17, 4  ;;  %s2077_s30 = sshll.u32 (!%p203_p9), %s2622_s22, 8 }
  0x14   : > { %s2873_s8 = scalar_lea.hbm (!%p203_p9), %s2924_s5, %s2077_s30  ;;  %s2877_s22 = scalar_lea.sflag (!%p203_p9), [#allocation3], %s232_s17 }
  0x15   : > { %s2936_s9 = smov (!%p242_p10, %s2026_s9), 7  ;;  %s2938_s14 = smov (!%p236_p11, %s2024_s14), 3 }
  0x16   : > { %s2027_s25 = sshll.u32 %s2936_s9, 3  ;;  %s2025_s7 = sshll.u32 %s2938_s14, 3 }
  0x17   : > { %s245_s6 = scalar_lea.vmem %s2920_s1, %s2027_s25  ;;  %s239_s11 = scalar_lea.vmem %s2919_s0, %s2025_s7 }
  0x18   : > { %v250_v10 = vld [vmem:[%s245_s6] sm:$0xff]  ;;  %v251_v11 = vld [vmem:[%s245_s6 + $0x8] sm:$0xff]  ;;  %v252_v12 = vld [vmem:[%s245_s6 + $0x10] sm:$0xff]  ;;  %s2563_s9 = smov 112   ;;  %s2566_s14 = smov 8  }
  0x19   : > { %2153 = vmatprep.mubr.msk.f32.mxu1 %vm342_vm3, %v250_v10  ;;  %v248_v13 = vld [vmem:[%s239_s11] sm:$0xff]  ;;  %v249_v14 = vld [vmem:[%s239_s11 + $0x8] sm:$0xff]  ;;  %v253_v15 = vld [vmem:[%s245_s6 + $0x18] sm:$0xff]  ;;  %s234_s25 = scalar_lea.vmem [#allocation2], %s2023_s23  ;;  %s2569_s11 = smov [#allocation2]  }
  0x1a   : > { %2154 = vmatmul.mubr.msk.f32.vlgmr.msra.gmra.mrb[0].mxu1 %vm342_vm3, %v251_v11  ;;  %2146 = vmatprep.mubr.msk.f32.mxu0 %vm256_vm4, %v248_v13  ;;  %s1945_s26 = sshll.u32 %s234_s25, 4  ;;  %s2867_s26 = int_to_ptr.vmem [resolvable:$true] %s1945_s26 }
  0x1b   : > { %2156 = vmatprep.mubr.msk.f32.mxu1 %vm342_vm3, %v252_v12  ;;  %2147 = vmatmul.mubr.msk.f32.vlgmr.msra.gmra.mrb[0].mxu0 %vm256_vm4, %v249_v14  ;;  %s2495_s10 = scalar_lea.vmem %s2867_s26, 256 }
  0x1c   : > { %2296 = vmatpush3.bf16.msk.msra.mxu0 %vm2656_vm2, %v2291_v9  ;;  %2163 = vmatprep.mubr.msk.f32.mxu0 %vm342_vm3, %v250_v10  ;;  %p2496_p12 = scmp.ne.s32.totalorder %s2867_s26, %s2495_s10 }
  0x1d   : > { %2301 = vmatprep.subr.bf16.mxu0 %v2560_v16 }
  0x1e   : > { %2157 = vmatmul.mubr.msk.f32.gmra.mrb[2].mxu1 %vm342_vm3, %v253_v15  ;;  %p2497_p13 = pnand %p2496_p12, %p2639_p5 }
  0x1f   : > { %2164 = vmatmul.mubr.msk.f32.vlgmr.msra.gmra.mrb[2].mxu0 %vm342_vm3, %v251_v11  ;;  %2173 = vmatprep.mubr.msk.f32.mxu1 %vm2561_vm5, %v2562_v17 }
  0x20   : > { %2166 = vmatprep.mubr.msk.f32.mxu0 %vm342_vm3, %v252_v12  ;;  %p2498_p0 = pneg %p2497_p13 }
  0x23   : > { %2167 = vmatmul.mubr.msk.f32.gmra.mrb[4].mxu0 %vm342_vm3, %v253_v15 }
  0x24   : > { %2180 = vmatprep.mubr.msk.f32.mxu0 %vm2561_vm5, %v2562_v17 }
  0xed   : > { %v2155_v18 = vpop.f32.mrb[0].mxu1 }
  0xee   : > { %v425_v19 = vpop.f32.mrb[1].mxu1  ;;  %v2148_v20 = vpop.f32.mrb[0].mxu0 }
  0xef   : > { %v2298_v21 = vpack.c.bf16 %v2155_v18, %v425_v19  ;;  %v2413_v22 = vpack.i.bf16 %v2155_v18, %v425_v19  ;;  %v329_v24 = vpop.f32.mrb[1].mxu0  ;;  %v339_v29 = vmul.f32 0.28867513, %v2148_v20 }
  0xf0   : > { %v338_v30 = vmul.f32 0.28867513, %v329_v24 }
  0xf1   : > { %2414 = vrot.lane.b32.xlu1 %v2413_v22, %s2563_s9  ;;  %2404 = vrot.lane.b32.xlu0 %v2413_v22, %s2564_s12  ;;  %v2158_v25 = vpop.f32.mrb[2].mxu1 }
  0xf2   : > { %2300 = vmatpush3.bf16.xpose.msk.msra.mxu1 %vm2705_vm7, %v2298_v21  ;;  %v435_v26 = vpop.f32.mrb[3].mxu1  ;;  %v2731_v31 = vpop.f32.mrb[2].mxu0 }
  0xf3   : > { %v2302_v27 = vpack.c.bf16 %v2158_v25, %v435_v26  ;;  %v2418_v28 = vpack.i.bf16 %v2158_v25, %v435_v26  ;;  %2305 = vmatprep.subr.bf16.mxu1 %v2560_v16  ;;  %v2733_v32 = vpop.f32.mrb[3].mxu0 }
  0xf4   : > { %v2330_v33 = vpack.c.bf16 %v2731_v31, %v2733_v32  ;;  %v2740_v34 = vpack.i.bf16 %v2731_v31, %v2733_v32 }
  0xf5   : > { %2419 = vrot.lane.b32.xlu1 %v2418_v28, %s2563_s9  ;;  %2409 = vrot.lane.b32.xlu0 %v2418_v28, %s2564_s12 }
  0xf6   : > { %2304 = vmatpush3.bf16.xpose.msk.msra.mxu0 %vm2705_vm7, %v2302_v27  ;;  %v2742_v35 = vpop.f32.mrb[4].mxu0 }
  0xf7   : > { %2309 = vmatprep.subr.bf16.mxu0 %v2560_v16  ;;  %v525_v36 = vpop.f32.mrb[5].mxu0 }
  0xf8   : > { %v2333_v37 = vpack.c.bf16 %v2742_v35, %v525_v36  ;;  %v2747_v38 = vpack.i.bf16 %v2742_v35, %v525_v36 }
  0xf9   : > { %2174 = vmatmul.mubr.msk.f32.vlgmr.msra.gmra.mrb[4].mxu1 %vm616_vm6, %v338_v30  ;;  %538 = vrot.lane.b32.xlu1 %v339_v29, %s2564_s12 }
  0xfa   : > { %536 = vrot.lane.b32.xlu0 %v338_v30, %s2564_s12  ;;  %2187 = vmatprep.mubr.msk.f32.mxu1 %vm2561_vm5, %v2562_v17 }
  0xfd   : > { %2181 = vmatmul.mubr.msk.f32.vlgmr.msra.gmra.mrb[6].mxu0 %vm616_vm6, %v339_v29  ;;  %2429 = vrot.lane.b32.xlu1 %v2418_v28, %s2565_s13 }
  0xfe   : > { %2424 = vrot.lane.b32.xlu0 %v2413_v22, %s2565_s13  ;;  %2194 = vmatprep.mubr.msk.f32.mxu0 %vm2561_vm5, %v2562_v17 }
 0x101   : > { %542 = vrot.lane.b32.xlu1 %v339_v29, %s2563_s9 }
 0x102   : > { %540 = vrot.lane.b32.xlu0 %v338_v30, %s2563_s9 }
 0x105   : > { %546 = vrot.lane.b32.xlu1 %v339_v29, %s2565_s13 }
 0x106   : > { %544 = vrot.lane.b32.xlu0 %v338_v30, %s2565_s13 }
 0x109   : > { %2434 = vrot.lane.b32.xlu1 %v2740_v34, %s2564_s12 }
 0x10a   : > { %2444 = vrot.lane.b32.xlu0 %v2747_v38, %s2564_s12 }
 0x10d   : > { %2439 = vrot.lane.b32.xlu1 %v2740_v34, %s2563_s9 }
 0x111   : > { %2449 = vrot.lane.b32.xlu1 %v2747_v38, %s2563_s9  ;;  %s2499_s9 = sshll.u32 %s2569_s11, 4  ;;  %s2500_s9 = int_to_ptr.vmem [resolvable:$false] %s2499_s9 }
 0x112   : > { %s2501_s12 = scalar_lea.vmem %s2500_s9, 512  ;;  %p2502_p1 = scmp.lt.s32.totalorder %s2867_s26, %s2500_s9 }
 0x113   : > { %p2503_p2 = scmp.lt.s32.totalorder %s2501_s12, %s2495_s10 }
 0x115   : > { %p2504_p3 = por %p2503_p2, %p2502_p1 }
 0x117   : > { %p2505_p4 = pnand %p2504_p3, %p2498_p0 }
 0x163   : > { %v2415_v39 = vpop.permute.xlu1 %2414  ;;  %v2405_v40 = vpop.permute.xlu0 %2404 }
 0x164   : > { %v2407_v41 = vunpack.i.h.bf16 %v2405_v40  ;;  %v2406_v42 = vunpack.i.l.bf16 %v2405_v40  ;;  %v2417_v48 = vunpack.i.h.bf16 %v2415_v39  ;;  %v2416_v49 = vunpack.i.l.bf16 %v2415_v39 }
 0x166   : > { %v2306_v43 = vpack.c.bf16 %v2407_v41, %v2406_v42  ;;  %v2314_v53 = vpack.c.bf16 %v2417_v48, %v2416_v49 }
 0x167   : > { %v2420_v44 = vpop.permute.xlu1 %2419  ;;  %v2410_v45 = vpop.permute.xlu0 %2409 }
 0x168   : > { %v2412_v46 = vunpack.i.h.bf16 %v2410_v45  ;;  %v2411_v47 = vunpack.i.l.bf16 %v2410_v45  ;;  %2308 = vmatpush3.bf16.xpose.msk.msra.mxu1 %vm2705_vm7, %v2306_v43  ;;  %v2422_v54 = vunpack.i.h.bf16 %v2420_v44  ;;  %v2421_v55 = vunpack.i.l.bf16 %v2420_v44 }
 0x169   : > { %2313 = vmatprep.subr.bf16.mxu1 %v2560_v16 }
 0x16a   : > { %v2310_v50 = vpack.c.bf16 %v2412_v46, %v2411_v47  ;;  %v2318_v57 = vpack.c.bf16 %v2422_v54, %v2421_v55 }
 0x16b   : > { %v539_v52 = vpop.permute.xlu1 %538 }
 0x16c   : > { %v537_v51 = vpop.permute.xlu0 %536  ;;  %2312 = vmatpush3.bf16.xpose.msk.msra.mxu0 %vm2705_vm7, %v2310_v50 }
 0x16d   : > { %2317 = vmatprep.subr.bf16.mxu0 %v2560_v16 }
 0x16f   : > { %2188 = vmatmul.mubr.msk.f32.vlgmr.msra.gmra.mrb[6].mxu1 %vm616_vm6, %v537_v51  ;;  %v2430_v60 = vpop.permute.xlu1 %2429 }
 0x170   : > { %v2425_v56 = vpop.permute.xlu0 %2424  ;;  %2316 = vmatpush3.bf16.xpose.msk.msra.mxu1 %vm2705_vm7, %v2314_v53  ;;  %2201 = vmatprep.mubr.msk.f32.mxu1 %vm2561_vm5, %v2562_v17  ;;  %v2432_v61 = vunpack.i.h.bf16 %v2430_v60  ;;  %v2431_v62 = vunpack.i.l.bf16 %v2430_v60 }
 0x171   : > { %2321 = vmatprep.subr.bf16.mxu1 %v2560_v16  ;;  %v2427_v58 = vunpack.i.h.bf16 %v2425_v56  ;;  %v2426_v59 = vunpack.i.l.bf16 %v2425_v56 }
 0x172   : > { %v2326_v1 = vpack.c.bf16 %v2432_v61, %v2431_v62 }
 0x173   : > { %2195 = vmatmul.mubr.msk.f32.vlgmr.msra.gmra.mrb[8].mxu0 %vm616_vm6, %v539_v52  ;;  %v2322_v63 = vpack.c.bf16 %v2427_v58, %v2426_v59  ;;  %v543_v2 = vpop.permute.xlu1 %542 }
 0x174   : > { %2320 = vmatpush3.bf16.xpose.msk.msra.mxu0 %vm2705_vm7, %v2318_v57  ;;  %2208 = vmatprep.mubr.msk.f32.mxu0 %vm2561_vm5, %v2562_v17  ;;  %v541_v0 = vpop.permute.xlu0 %540 }
 0x175   : > { %2325 = vmatprep.subr.bf16.mxu0 %v2560_v16 }
 0x177   : > { %2202 = vmatmul.mubr.msk.f32.vlgmr.msra.gmra.mrb[8].mxu1 %vm616_vm6, %v541_v0  ;;  %v547_v4 = vpop.permute.xlu1 %546 }
 0x178   : > { %2324 = vmatpush3.bf16.xpose.msk.msra.mxu1 %vm2705_vm7, %v2322_v63  ;;  %2215 = vmatprep.mubr.msk.f32.mxu1 %vm2561_vm5, %v2562_v17  ;;  %v545_v3 = vpop.permute.xlu0 %544 }
 0x179   : > { %2329 = vmatprep.subr.bf16.mxu1 %v2560_v16 }
 0x17b   : > { %2209 = vmatmul.mubr.msk.f32.vlgmr.msra.gmra.mrb[10].mxu0 %vm616_vm6, %v543_v2  ;;  %v2435_v22 = vpop.permute.xlu1 %2434 }
 0x17c   : > { %2328 = vmatpush3.bf16.xpose.msk.msra.mxu0 %vm2705_vm7, %v2326_v1  ;;  %2222 = vmatprep.mubr.msk.f32.mxu0 %vm2561_vm5, %v2562_v17  ;;  %v2445_v30 = vpop.permute.xlu0 %2444  ;;  %v2437_v43 = vunpack.i.h.bf16 %v2435_v22  ;;  %v2436_v44 = vunpack.i.l.bf16 %v2435_v22 }
 0x17d   : > { %2332 = vmatprep.subr.bf16.mxu0 %v2560_v16  ;;  %v2447_v46 = vunpack.i.h.bf16 %v2445_v30  ;;  %v2446_v47 = vunpack.i.l.bf16 %v2445_v30 }
 0x17e   : > { %v2336_v45 = vpack.c.bf16 %v2437_v43, %v2436_v44 }
 0x17f   : > { %2216 = vmatmul.mubr.msk.f32.vlgmr.msra.gmra.mrb[10].mxu1 %vm616_vm6, %v545_v3  ;;  %v2440_v29 = vpop.permute.xlu1 %2439  ;;  %v2339_v49 = vpack.c.bf16 %v2447_v46, %v2446_v47 }
 0x180   : > { %2331 = vmatpush3.bf16.msra.mxu1 %v2330_v33  ;;  %2229 = vmatprep.mubr.msk.f32.mxu1 %vm2561_vm5, %v2562_v17  ;;  %v2441_v58 = vunpack.i.l.bf16 %v2440_v29 }
 0x181   : > { %2335 = vmatprep.subr.bf16.mxu1 %v2560_v16 }
 0x183   : > { %2223 = vmatmul.mubr.msk.f32.vlgmr.msra.gmra.mrb[12].mxu0 %vm616_vm6, %v547_v4  ;;  %v2450_v35 = vpop.permute.xlu1 %2449 }
 0x184   : > { %2334 = vmatpush3.bf16.msra.mxu0 %v2333_v37  ;;  %2236 = vmatprep.mubr.msk.f32.mxu0 %vm2561_vm5, %v2562_v17  ;;  %v2452_v0 = vunpack.i.h.bf16 %v2450_v35  ;;  %v2451_v1 = vunpack.i.l.bf16 %v2450_v35 }
 0x185   : > { %2338 = vmatprep.subr.bf16.mxu0 %v2560_v16 }
 0x1cc   : > { %v689_v5 = vpop.f32.mrb[4].mxu1 }
 0x1cd   : > { %v1225_v6 = vsel %vm256_vm4, %v689_v5, -inf  ;;  %v2175_v7 = vpop.f32.mrb[5].mxu1 }
 0x1ce   : > { %1226 = vmax.xlane.f32.xlu0 %v1225_v6  ;;  %v2345_v7 = vpack.c.bf16 %v2452_v0, %v2451_v1 }
 0x1d0   : > { %v765_v8 = vpop.f32.mrb[6].mxu0 }
 0x1d1   : > { %v1228_v9 = vsel %vm256_vm4, %v765_v8, -inf  ;;  %v2182_v10 = vpop.f32.mrb[7].mxu0 }
 0x1d2   : > { %1229 = vmax.xlane.f32.xlu1 %v1228_v9 }
 0x242   : > { %v841_v11 = vpop.f32.mrb[6].mxu1 }
 0x243   : > { %v1231_v12 = vsel %vm256_vm4, %v841_v11, -inf  ;;  %v2189_v13 = vpop.f32.mrb[7].mxu1 }
 0x244   : > { %1232 = vmax.xlane.f32.xlu0 %v1231_v12 }
 0x246   : > { %v917_v14 = vpop.f32.mrb[8].mxu0 }
 0x247   : > { %v2196_v15 = vpop.f32.mrb[9].mxu0  ;;  %v1234_v18 = vsel %vm256_vm4, %v917_v14, -inf }
 0x248   : > { %1235 = vmax.xlane.f32.xlu0 %v1234_v18 }
 0x24a   : > { %v993_v19 = vpop.f32.mrb[8].mxu1 }
 0x24b   : > { %v2203_v20 = vpop.f32.mrb[9].mxu1  ;;  %v1237_v21 = vsel %vm256_vm4, %v993_v19, -inf }
 0x24c   : > { %1238 = vmax.xlane.f32.xlu1 %v1237_v21 }
 0x24e   : > { %v1069_v23 = vpop.f32.mrb[10].mxu0 }
 0x24f   : > { %v2210_v24 = vpop.f32.mrb[11].mxu0  ;;  %v1240_v25 = vsel %vm256_vm4, %v1069_v23, -inf }
 0x250   : > { %1241 = vmax.xlane.f32.xlu0 %v1240_v25 }
 0x252   : > { %v2801_v26 = vpop.f32.mrb[10].mxu1 }
 0x253   : > { %v2217_v27 = vpop.f32.mrb[11].mxu1  ;;  %v1243_v28 = vsel %vm256_vm4, %v2801_v26, -inf }
 0x254   : > { %1244 = vmax.xlane.f32.xlu1 %v1243_v28 }
 0x256   : > { %v2805_v31 = vpop.f32.mrb[12].mxu0 }
 0x257   : > { %v2224_v32 = vpop.f32.mrb[13].mxu0  ;;  %v1246_v33 = vsel %vm256_vm4, %v2805_v31, -inf }
 0x258   : > { %1247 = vmax.xlane.f32.xlu0 %v1246_v33 }
 0x25b   : > { %v1227_v36 = vpop.xlane.xlu0 %1226 }
 0x25c   : > { %v1249_v37 = vsub.f32 %v689_v5, %v1227_v36 }
 0x25e   : > { %v1257_v39 = vmul.f32 1.442695, %v1249_v37 }
 0x25f   : > { %v1230_v40 = vpop.xlane.xlu1 %1229 }
 0x260   : > { %2463 = vpow2.f32 %v1257_v39  ;;  %v1250_v41 = vsub.f32 %v765_v8, %v1230_v40 }
 0x262   : > { %v1259_v42 = vmul.f32 1.442695, %v1250_v41 }
 0x264   : > { %2465 = vpow2.f32 %v1259_v42 }
 0x265   : > { %2459 = vrot.lane.b32.xlu1 %v2747_v38, %s2565_s13 }
 0x26a   : > { %v2811_v48 = vpop.eup %2463 }
 0x26b   : > { %2230 = vmatmul.mubr.msk.f32.vlgmr.msra.gmra.mrb[12].mxu1 %vm256_vm4, %v2811_v48  ;;  %v1273_v30 = vsel %vm256_vm4, %v2811_v48, 0.0 }
 0x26c   : > { %2337 = vmatpush3.bf16.msra.mxu1 %v2336_v45  ;;  %2243 = vmatprep.mubr.msk.f32.mxu1 %vm2561_vm5, %v2562_v17 }
 0x26d   : > { %2341 = vmatprep.subr.bf16.mxu1 %v2560_v16 }
 0x26e   : > { %v2818_v50 = vpop.eup %2465  ;;  %2454 = vrot.lane.b32.xlu0 %v2740_v34, %s2565_s13  ;;  %v2442_v34 = vunpack.i.h.bf16 %v2440_v29 }
 0x26f   : > { %2237 = vmatmul.mubr.msk.f32.vlgmr.msra.gmra.mrb[14].mxu0 %vm256_vm4, %v2818_v50 }
 0x270   : > { %2340 = vmatpush3.bf16.msra.mxu0 %v2339_v49  ;;  %2250 = vmatprep.mubr.msk.f32.mxu0 %vm2561_vm5, %v2562_v17  ;;  %v2342_v63 = vpack.c.bf16 %v2442_v34, %v2441_v58 }
 0x271   : > { %2344 = vmatprep.subr.bf16.mxu0 %v2560_v16 }
 0x2d1   : > { %v1233_v38 = vpop.xlane.xlu0 %1232 }
 0x2d2   : > { %v1251_v51 = vsub.f32 %v841_v11, %v1233_v38 }
 0x2d4   : > { %v1261_v52 = vmul.f32 1.442695, %v1251_v51 }
 0x2d5   : > { %v1236_v53 = vpop.xlane.xlu0 %1235 }
 0x2d6   : > { %2467 = vpow2.f32 %v1261_v52  ;;  %v1252_v54 = vsub.f32 %v917_v14, %v1236_v53 }
 0x2d8   : > { %v1263_v55 = vmul.f32 1.442695, %v1252_v54 }
 0x2d9   : > { %v1239_v56 = vpop.xlane.xlu1 %1238 }
 0x2da   : > { %2469 = vpow2.f32 %v1263_v55  ;;  %v1253_v57 = vsub.f32 %v993_v19, %v1239_v56 }
 0x2dc   : > { %v1265_v59 = vmul.f32 1.442695, %v1253_v57 }
 0x2dd   : > { %v1242_v60 = vpop.xlane.xlu0 %1241 }
 0x2de   : > { %2471 = vpow2.f32 %v1265_v59  ;;  %v1254_v61 = vsub.f32 %v1069_v23, %v1242_v60 }
 0x2e0   : > { %v2468_v62 = vpop.eup %2467  ;;  %v1267_v2 = vmul.f32 1.442695, %v1254_v61 }
 0x2e1   : > { %2244 = vmatmul.mubr.msk.f32.vlgmr.msra.gmra.mrb[14].mxu1 %vm256_vm4, %v2468_v62  ;;  %v1245_v3 = vpop.xlane.xlu1 %1244  ;;  %v1279_v4 = vsel %vm256_vm4, %v2468_v62, 0.0 }
 0x2e2   : > { %2473 = vpow2.f32 %v1267_v2  ;;  %2343 = vmatpush3.bf16.msra.mxu1 %v2342_v63  ;;  %v1255_v5 = vsub.f32 %v2801_v26, %v1245_v3  ;;  %1280 = vadd.xlane.f32.xlu0 %v1279_v4 }
 0x2e3   : > { %2257 = vmatprep.mubr.msk.f32.mxu1 %vm2561_vm5, %v2562_v17  ;;  %2347 = vmatprep.subr.bf16.mxu1 %v2560_v16 }
 0x2e4   : > { %v2470_v6 = vpop.eup %2469  ;;  %v1269_v8 = vmul.f32 1.442695, %v1255_v5 }
 0x2e5   : > { %2251 = vmatmul.mubr.msk.f32.vlgmr.msra.gmra.mrb[16].mxu0 %vm256_vm4, %v2470_v6  ;;  %v1248_v9 = vpop.xlane.xlu0 %1247  ;;  %v2460_v10 = vpop.permute.xlu1 %2459  ;;  %v1282_v11 = vsel %vm256_vm4, %v2470_v6, 0.0 }
 0x2e6   : > { %2475 = vpow2.f32 %v1269_v8  ;;  %2346 = vmatpush3.bf16.msra.mxu0 %v2345_v7  ;;  %v1256_v12 = vsub.f32 %v2805_v31, %v1248_v9  ;;  %1283 = vadd.xlane.f32.xlu1 %v1282_v11  ;;  %v2462_v15 = vunpack.i.h.bf16 %v2460_v10  ;;  %v2461_v18 = vunpack.i.l.bf16 %v2460_v10 }
 0x2e7   : > { %2264 = vmatprep.mubr.msk.f32.mxu0 %vm2561_vm5, %v2562_v17  ;;  %2350 = vmatprep.subr.bf16.mxu0 %v2560_v16  ;;  %v1276_v31 = vsel %vm256_vm4, %v2818_v50, 0.0 }
 0x2e8   : > { %v2472_v13 = vpop.eup %2471  ;;  %v1271_v14 = vmul.f32 1.442695, %v1256_v12  ;;  %v2351_v24 = vpack.c.bf16 %v2462_v15, %v2461_v18 }
 0x2e9   : > { %v2455_v19 = vpop.permute.xlu0 %2454  ;;  %2258 = vmatmul.mubr.msk.f32.vlgmr.msra.gmra.mrb[16].mxu1 %vm256_vm4, %v2472_v13  ;;  %v1285_v20 = vsel %vm256_vm4, %v2472_v13, 0.0 }
 0x2ea   : > { %2477 = vpow2.f32 %v1271_v14  ;;  %v2457_v21 = vunpack.i.h.bf16 %v2455_v19  ;;  %v2456_v22 = vunpack.i.l.bf16 %v2455_v19  ;;  %1286 = vadd.xlane.f32.xlu0 %v1285_v20  ;;  %2271 = vmatprep.mubr.msk.f32.mxu1 %vm2561_vm5, %v2562_v17 }
 0x2ec   : > { %v2474_v23 = vpop.eup %2473  ;;  %v2348_v25 = vpack.c.bf16 %v2457_v21, %v2456_v22 }
 0x2ed   : > { %2265 = vmatmul.mubr.msk.f32.vlgmr.msra.gmra.mrb[18].mxu0 %vm256_vm4, %v2474_v23  ;;  %v1288_v16 = vsel %vm256_vm4, %v2474_v23, 0.0 }
 0x2ee   : > { %2352 = vmatpush3.bf16.msra.mxu0 %v2351_v24  ;;  %2349 = vmatpush3.bf16.msra.mxu1 %v2348_v25 }
 0x2ef   : > { %1289 = vadd.xlane.f32.xlu0 %v1288_v16  ;;  %2278 = vmatprep.mubr.msk.f32.mxu0 %vm2561_vm5, %v2562_v17 }
 0x2f0   : > { %v2476_v26 = vpop.eup %2475 }
 0x2f1   : > { %2272 = vmatmul.mubr.msk.f32.vlgmr.msra.gmra.mrb[18].mxu1 %vm256_vm4, %v2476_v26  ;;  %v1291_v27 = vsel %vm256_vm4, %v2476_v26, 0.0 }
 0x2f2   : > { %1292 = vadd.xlane.f32.xlu1 %v1291_v27 }
 0x2f4   : > { %v2478_v28 = vpop.eup %2477 }
 0x2f5   : > { %2279 = vmatmul.mubr.msk.f32.vlgmr.msra.gmra.mrb[20].mxu0 %vm256_vm4, %v2478_v28  ;;  %v1294_v29 = vsel %vm256_vm4, %v2478_v28, 0.0 }
 0x2f6   : > { %1295 = vadd.xlane.f32.xlu0 %v1294_v29  ;;  %1274 = vadd.xlane.f32.xlu1 %v1273_v30 }
 0x2fa   : > { %1277 = vadd.xlane.f32.xlu0 %v1276_v31 }
 0x33e   : > { %v1374_v17 = vpop.f32.mrb[12].mxu1 }
 0x33f   : > { %v2231_v32 = vpop.f32.mrb[13].mxu1 }
 0x342   : > { %v2855_v33 = vpop.f32.mrb[14].mxu0 }
 0x343   : > { %v2238_v35 = vpop.f32.mrb[15].mxu0 }
 0x36f   : > { %v1281_v36 = vpop.xlane.xlu0 %1280 }
 0x370   : > { %2479 = vrcp.f32 %v1281_v36 }
 0x373   : > { %v1284_v37 = vpop.xlane.xlu1 %1283 }
 0x374   : > { %2481 = vrcp.f32 %v1284_v37 }
 0x377   : > { %v1287_v39 = vpop.xlane.xlu0 %1286 }
 0x378   : > { %2483 = vrcp.f32 %v1287_v39 }
 0x37a   : > { %v2480_v41 = vpop.eup %2479 }
 0x37c   : > { %v1290_v40 = vpop.xlane.xlu0 %1289 }
 0x37d   : > { %2485 = vrcp.f32 %v1290_v40 }
 0x37e   : > { %v2482_v46 = vpop.eup %2481 }
 0x37f   : > { %v1293_v45 = vpop.xlane.xlu1 %1292 }
 0x380   : > { %2487 = vrcp.f32 %v1293_v45 }
 0x382   : > { %v2484_v38 = vpop.eup %2483 }
 0x383   : > { %v1296_v50 = vpop.xlane.xlu0 %1295  ;;  %v1275_v1 = vpop.xlane.xlu1 %1274 }
 0x384   : > { %2489 = vrcp.f32 %v1296_v50 }
 0x385   : > { %2491 = vrcp.f32 %v1275_v1 }
 0x387   : > { %v2486_v54 = vpop.eup %2485  ;;  %v1278_v2 = vpop.xlane.xlu0 %1277 }
 0x388   : > { %2493 = vrcp.f32 %v1278_v2 }
 0x38a   : > { %v2488_v34 = vpop.eup %2487 }
 0x38e   : > { %v2490_v61 = vpop.eup %2489 }
 0x38f   : > { %v2492_v4 = vpop.eup %2491 }
 0x390   : > { %v1889_v7 = vmul.f32 %v2492_v4, %v1374_v17 }
 0x392   : > { %v2494_v8 = vpop.eup %2493 }
 0x393   : > { %v1890_v13 = vmul.f32 %v2494_v8, %v2855_v33 }
 0x3b4   : > { %v1520_v42 = vpop.f32.mrb[14].mxu1 }
 0x3b5   : > { %v1891_v43 = vmul.f32 %v2480_v41, %v1520_v42  ;;  %v2245_v44 = vpop.f32.mrb[15].mxu1 }
 0x3b7   : > { %1899 = vrot.lane.b32.xlu1 %v1891_v43, %s2566_s14 }
 0x3b8   : > { %v1593_v47 = vpop.f32.mrb[16].mxu0 }
 0x3b9   : > { %v1892_v48 = vmul.f32 %v2482_v46, %v1593_v47  ;;  %v2252_v49 = vpop.f32.mrb[17].mxu0 }
 0x3bb   : > { %1901 = vrot.lane.b32.xlu0 %v1892_v48, %s2566_s14 }
 0x3bc   : > { %v1666_v51 = vpop.f32.mrb[16].mxu1 }
 0x3bd   : > { %v1893_v52 = vmul.f32 %v2484_v38, %v1666_v51  ;;  %v2259_v53 = vpop.f32.mrb[17].mxu1 }
 0x3bf   : > { %1907 = vrot.lane.b32.xlu1 %v1893_v52, %s2567_s15 }
 0x3c0   : > { %v1739_v55 = vpop.f32.mrb[18].mxu0 }
 0x3c1   : > { %v1894_v56 = vmul.f32 %v2486_v54, %v1739_v55  ;;  %v2266_v57 = vpop.f32.mrb[19].mxu0 }
 0x3c3   : > { %1909 = vrot.lane.b32.xlu1 %v1894_v56, %s2567_s15 }
 0x3c4   : > { %v1812_v58 = vpop.f32.mrb[18].mxu1 }
 0x3c5   : > { %v1895_v59 = vmul.f32 %v2488_v34, %v1812_v58  ;;  %v2273_v60 = vpop.f32.mrb[19].mxu1 }
 0x3c7   : > { %1915 = vrot.lane.b32.xlu0 %v1895_v59, %s2568_s16 }
 0x3c8   : > { %v1885_v62 = vpop.f32.mrb[20].mxu0 }
 0x3c9   : > { %v1896_v63 = vmul.f32 %v2490_v61, %v1885_v62  ;;  %v2280_v0 = vpop.f32.mrb[21].mxu0 }
 0x3cb   : > { %1917 = vrot.lane.b32.xlu1 %v1896_v63, %s2568_s16 }
 0x429   : > { %v1900_v3 = vpop.permute.xlu1 %1899 }
 0x42a   : > { %v1921_v9 = vsel %vm616_vm6, %v1889_v7, %v1900_v3 }
 0x42d   : > { %v1902_v6 = vpop.permute.xlu0 %1901 }
 0x42e   : > { %v1922_v15 = vsel %vm616_vm6, %v1890_v13, %v1902_v6 }
 0x431   : > { %v1908_v5 = vpop.permute.xlu1 %1907 }
 0x432   : > { %v1923_v10 = vsel %vm256_vm4, %v1921_v9, %v1908_v5 }
 0x435   : > { %v1910_v11 = vpop.permute.xlu1 %1909 }
 0x436   : > { %v1924_v18 = vsel %vm256_vm4, %v1922_v15, %v1910_v11 }
 0x439   : > { %v1916_v12 = vpop.permute.xlu0 %1915 }
 0x43a   : > { %v1926_v14 = vsel %vm1925_vm8, %v1923_v10, %v1916_v12 }
 0x43b   : > { %1929 = vst.msk [vmem:[%s234_s25] sm:$0xff] %vm1928_vm9, %v1926_v14 }
 0x43d   : > { %v1918_v19 = vpop.permute.xlu1 %1917 }
 0x43e   : > { %v1927_v20 = vsel %vm1925_vm8, %v1924_v18, %v1918_v19 }
 0x43f   : > { %1930 = vst.msk [vmem:[%s234_s25 + $0x8] sm:$0xff] %vm1928_vm9, %v1927_v20 }
 0x440   : > { %2508 = shalt.err (!%p2505_p4)
}
 0x441   : > { %s2509_s13 = scalar_lea.hbm %s2873_s8, 256  ;;  %s2513_s17 = scalar_lea.hbm %s2924_s5, 512 }
 0x442   : > { %p2510_p7 = scmp.ne.s32.totalorder %s2873_s8, %s2509_s13  ;;  %p2514_p10 = scmp.lt.u32.totalorder %s2873_s8, %s2924_s5 }
 0x443   : > { %p2515_p11 = scmp.lt.u32.totalorder %s2513_s17, %s2509_s13  ;;  %p2517_p13 = scmp.lt.u32.totalorder %s2509_s13, %s2873_s8 }
 0x444   : > { %p2511_p8 = pnand %p2510_p7, %p2639_p5 }
 0x445   : > { %p2516_p12 = por %p2515_p11, %p2514_p10 }
 0x446   : > { %p2512_p9 = pneg %p2511_p8 }
 0x447   : > { %p2518_p0 = por %p2517_p13, %p2516_p12 }
 0x449   : > { %p2519_p1 = pnand %p2518_p0, %p2512_p9 }
 0x44b   : > { %2522 = shalt.err (!%p2519_p1)
}
 0x44c   : > { %s2570_s30 = smov 128  }
 0x44d   : > { %2353 = dma.vmem_to_hbm [thread:$0]  (%p2639_p5), %s2867_s26, 256, %s2873_s8, %s2877_s22, %s2570_s30, %s2570_s30, %s2566_s14  }
 0x44e PF: > { %p2359_p2 = scmp.ge.s32.totalorder %s2557_s21, 2  ;;  %s1960_s6 = sand.u32 1, %s2545_s18  }
 0x44f   : > { %s1961_s7 = scalar_lea.sflag [#allocation3], %s1960_s6 }
 0x450   : > { %p2356_p3 = pnand %p2359_p2, %p2643_p6 }
 0x452   : > { %2540 = dma.done.wait (!%p2356_p3), %s1961_s7, 256  }
 0x453   : > { %2542 = vsyncadd (!%p2356_p3), %s1961_s7, 4294967040  ;;  %p15_p4 = scmp.ge.s32.totalorder %s2626_s24, 4   ;;  %s2931_s18 = smov %s2549_s19 }
 0x454   : > { %s2932_s19 = smov %s2553_s20  ;;  %s2933_s20 = smov %s2637_s27 }
 0x455   : > { %s2934_s21 = smov %s2626_s24  ;;  %17 = sbr.rel (!%p15_p4) target bundleno = 3 (0x3), region = 78 }
 0x45c   :  { %1966 = vsyncpa [#allocation3], 1 }
 0x45d   :  { %1968 = vsyncpa [#allocation3 + $0x1], 1 }

</bundles_post_ra>
